<compile_context>
chip_gen: v7x
topology: tpu7x:2x2x1
jax: 0.10.0
libtpu: 0.0.40
codegen_flags: <defaults>
</compile_context>

<pallas_src>
import functools

import jax
import jax.numpy as jnp
from jax.experimental import pallas as pl
from jax.experimental.pallas import tpu as pltpu


def _vfl_kernel(pred_ref, gt_ref, label_ref, out_ref, *, alpha, gamma):
    # All math in f32 (matches torch autocast(enabled=False) on the BCE term);
    # inputs may arrive as bf16 / int8 / bool and are cast here, not upstream.
    x = pred_ref[...].astype(jnp.float32)       # logits
    z = gt_ref[...].astype(jnp.float32)         # targets
    lbl = label_ref[...].astype(jnp.float32)    # 0/1 label mask

    # Shared exp: e = exp(-|x|) feeds both sigmoid and log1p term of the BCE.
    e = jnp.exp(-jnp.abs(x))
    denom = 1.0 + e
    # sigmoid(x) = 1/(1+e) for x>=0, e/(1+e) for x<0  (exact divide for accuracy)
    p = jnp.where(x >= 0.0, 1.0, e) / denom

    # pred.sigmoid().pow(gamma): avoid float-exponent pow for small int gammas.
    if float(gamma) == 2.0:
        pg = p * p
    elif float(gamma).is_integer() and 1.0 <= float(gamma) <= 4.0:
        pg = p
        for _ in range(int(gamma) - 1):
            pg = pg * p
    else:
        pg = p ** gamma

    weight = alpha * pg * (1.0 - lbl) + z * lbl

    # Numerically-stable binary_cross_entropy_with_logits (reduction='none'):
    #   max(x, 0) - x * z + log1p(exp(-|x|))
    bce = jnp.maximum(x, 0.0) - x * z + jnp.log1p(e)

    lw = bce * weight                                   # (tm, C)

    # Per-block partial sum collapsed to a vreg-aligned (8, C) slab with pure
    # VPU adds (no cross-lane / cross-sublane reduce in the kernel).
    rows, cols = lw.shape
    part = lw.reshape(rows // 8, 8, cols).sum(axis=0)   # (8, C)
    out_ref[0] = part


def varifocal_loss(pred_score, gt_score, label, alpha=0.75, gamma=2.0, *, tm=2048):
    """Scalar f32 loss, identical semantics to the PyTorch module."""
    assert pred_score.shape == gt_score.shape == label.shape
    c = pred_score.shape[-1]
    pred2 = pred_score.reshape(-1, c)
    gt2 = gt_score.reshape(-1, c)
    lbl2 = label.reshape(-1, c)
    m = pred2.shape[0]

    # --- choose the row tile --------------------------------------------
    # Cap so 3 inputs x 2 pipeline buffers stay under ~16 MiB of VMEM
    # (safe on v5e/v6e/v7x); tm must be a multiple of 8 (sublane packing).
    bytes_per_row = (pred2.dtype.itemsize + gt2.dtype.itemsize + lbl2.dtype.itemsize) * c
    vmem_budget = 16 * 1024 * 1024
    tm_cap = max(8, (vmem_budget // (2 * bytes_per_row)) // 8 * 8)
    tm_eff = max(8, (min(int(tm), tm_cap) // 8) * 8)
    m8 = ((m + 7) // 8) * 8
    tm_eff = min(tm_eff, m8)

    # --- pad rows so the grid tiles evenly -------------------------------
    # Padding with pred=0, gt=0, label=1 contributes exactly 0 to the sum:
    #   weight = alpha*sig(0)^g*(1-1) + 0*1 = 0.
    nb = pl.cdiv(m, tm_eff)
    m_pad = nb * tm_eff
    pad = m_pad - m
    if pad:
        pred2 = jnp.pad(pred2, ((0, pad), (0, 0)))
        gt2 = jnp.pad(gt2, ((0, pad), (0, 0)))
        lbl2 = jnp.pad(lbl2, ((0, pad), (0, 0)), constant_values=1)

    kernel = functools.partial(_vfl_kernel, alpha=float(alpha), gamma=float(gamma))

    partials = pl.pallas_call(
        kernel,
        out_shape=jax.ShapeDtypeStruct((nb, 8, c), jnp.float32),
        grid_spec=pltpu.PrefetchScalarGridSpec(
            num_scalar_prefetch=0,
            grid=(nb,),
            in_specs=[
                pl.BlockSpec((tm_eff, c), lambda i: (i, 0)),
                pl.BlockSpec((tm_eff, c), lambda i: (i, 0)),
                pl.BlockSpec((tm_eff, c), lambda i: (i, 0)),
            ],
            out_specs=pl.BlockSpec((1, 8, c), lambda i: (i, 0, 0)),
        ),
        compiler_params=pltpu.CompilerParams(
            # fully independent per-block partial sums -> both v7x cores can run
            dimension_semantics=("parallel",),
            vmem_limit_bytes=32 * 1024 * 1024,
        ),
    )(pred2, gt2, lbl2)

    # Tiny final reduction over (nb, 8, C) partials done by XLA.
    return jnp.sum(partials)


def _reference(pred_score, gt_score, label, alpha=0.75, gamma=2.0):
    x = pred_score.astype(jnp.float32)
    z = gt_score.astype(jnp.float32)
    lbl = label.astype(jnp.float32)
    p = jax.nn.sigmoid(x)
    weight = alpha * (p ** gamma) * (1.0 - lbl) + z * lbl
    bce = jnp.maximum(x, 0.0) - x * z + jnp.log1p(jnp.exp(-jnp.abs(x)))
    return jnp.sum(bce * weight)


if __name__ == "__main__":
    key = jax.random.PRNGKey(0)
    k1, k2, k3 = jax.random.split(key, 3)

    # anchors-per-image style shape; C maps to lanes
    B, N, C = 2, 8, 128
    pred_score = jax.random.normal(k1, (B, N, C), dtype=jnp.float32)
    gt_score = jax.random.uniform(k2, (B, N, C), dtype=jnp.float32)
    label = (jax.random.uniform(k3, (B, N, C)) > 0.5).astype(jnp.float32)

    loss = varifocal_loss(pred_score, gt_score, label)
    loss = jax.block_until_ready(loss)
    ref = _reference(pred_score, gt_score, label)
    assert jnp.allclose(loss, ref, rtol=1e-4, atol=1e-3), (loss, ref)

    # second check: rows not a multiple of 8 (exercises the padding path)
    B2, N2, C2 = 2, 13, 128
    p2 = jax.random.normal(k1, (B2, N2, C2), dtype=jnp.float32)
    g2 = jax.random.uniform(k2, (B2, N2, C2), dtype=jnp.float32)
    l2 = (jax.random.uniform(k3, (B2, N2, C2)) > 0.5).astype(jnp.float32)
    loss2 = jax.block_until_ready(varifocal_loss(p2, g2, l2))
    ref2 = _reference(p2, g2, l2)
    assert jnp.allclose(loss2, ref2, rtol=1e-4, atol=1e-3), (loss2, ref2)

    print("KERNEL_OK")
</pallas_src>

<mosaic_0001>
module attributes {stable_mosaic.version = 11 : i64} {
  func.func @_vfl_kernel(%arg0: i32, %arg1: memref<16x128xf32, #tpu.memory_space<vmem>>, %arg2: memref<16x128xf32, #tpu.memory_space<vmem>>, %arg3: memref<16x128xf32, #tpu.memory_space<vmem>>, %arg4: memref<1x8x128xf32, #tpu.memory_space<vmem>>) attributes {dimension_semantics = [#tpu.dimension_semantics<parallel>], iteration_bounds = array<i64: 1>, scalar_prefetch = 0 : i64, scratch_operands = 0 : i64, tpu.core_type = #tpu.core_type<tc>, window_params = [{transform_indices = @transform_0, window_bounds = array<i64: 16, 128>}, {transform_indices = @transform_1, window_bounds = array<i64: 16, 128>}, {transform_indices = @transform_2, window_bounds = array<i64: 16, 128>}, {transform_indices = @transform_3, window_bounds = array<i64: 1, 8, 128>}]} {
    %c0 = arith.constant 0 : index
    %c0_0 = arith.constant 0 : index
    %0 = vector.load %arg1[%c0, %c0_0] : memref<16x128xf32, #tpu.memory_space<vmem>>, vector<16x128xf32>
    %c0_1 = arith.constant 0 : index
    %c0_2 = arith.constant 0 : index
    %1 = vector.load %arg2[%c0_1, %c0_2] : memref<16x128xf32, #tpu.memory_space<vmem>>, vector<16x128xf32>
    %c0_3 = arith.constant 0 : index
    %c0_4 = arith.constant 0 : index
    %2 = vector.load %arg3[%c0_3, %c0_4] : memref<16x128xf32, #tpu.memory_space<vmem>>, vector<16x128xf32>
    %3 = math.absf %0 : vector<16x128xf32>
    %cst = arith.constant 0.000000e+00 : f32
    %4 = vector.broadcast %cst : f32 to vector<16x128xf32>
    %5 = arith.subf %4, %3 : vector<16x128xf32>
    %6 = math.exp %5 : vector<16x128xf32>
    %cst_5 = arith.constant 1.000000e+00 : f32
    %7 = vector.broadcast %cst_5 : f32 to vector<16x128xf32>
    %8 = arith.addf %7, %6 : vector<16x128xf32>
    %cst_6 = arith.constant 0.000000e+00 : f32
    %9 = vector.broadcast %cst_6 : f32 to vector<16x128xf32>
    %10 = arith.cmpf oge, %0, %9 : vector<16x128xf32>
    %cst_7 = arith.constant 1.000000e+00 : f32
    %11 = vector.broadcast %cst_7 : f32 to vector<16x128xf32>
    %12 = arith.select %10, %11, %6 : vector<16x128xi1>, vector<16x128xf32>
    %13 = arith.divf %12, %8 : vector<16x128xf32>
    %14 = arith.mulf %13, %13 : vector<16x128xf32>
    %cst_8 = arith.constant 7.500000e-01 : f32
    %15 = vector.broadcast %cst_8 : f32 to vector<16x128xf32>
    %16 = arith.mulf %15, %14 : vector<16x128xf32>
    %cst_9 = arith.constant 1.000000e+00 : f32
    %17 = vector.broadcast %cst_9 : f32 to vector<16x128xf32>
    %18 = arith.subf %17, %2 : vector<16x128xf32>
    %19 = arith.mulf %16, %18 : vector<16x128xf32>
    %20 = arith.mulf %1, %2 : vector<16x128xf32>
    %21 = arith.addf %19, %20 : vector<16x128xf32>
    %cst_10 = arith.constant 0.000000e+00 : f32
    %22 = vector.broadcast %cst_10 : f32 to vector<16x128xf32>
    %23 = arith.maximumf %0, %22 : vector<16x128xf32>
    %24 = arith.mulf %0, %1 : vector<16x128xf32>
    %25 = arith.subf %23, %24 : vector<16x128xf32>
    %26 = math.log1p %6 : vector<16x128xf32>
    %27 = arith.addf %25, %26 : vector<16x128xf32>
    %28 = arith.mulf %27, %21 : vector<16x128xf32>
    %29 = vector.shape_cast %28 : vector<16x128xf32> to vector<2x8x128xf32>
    %cst_11 = arith.constant dense<0.000000e+00> : vector<8x128xf32>
    %30 = vector.multi_reduction <add>, %29, %cst_11 [0] : vector<2x8x128xf32> to vector<8x128xf32>
    %c0_12 = arith.constant 0 : index
    %c0_13 = arith.constant 0 : index
    %c0_14 = arith.constant 0 : index
    %31 = vector.load %arg4[%c0_12, %c0_13, %c0_14] : memref<1x8x128xf32, #tpu.memory_space<vmem>>, vector<1x8x128xf32>
    %32 = vector.shape_cast %31 : vector<1x8x128xf32> to vector<8x128xf32>
    %33 = vector.shape_cast %30 : vector<8x128xf32> to vector<1x8x128xf32>
    tpu.vector_store %arg4[%c0_12, %c0_13, %c0_14], %33 {strides = array<i32>} : memref<1x8x128xf32, #tpu.memory_space<vmem>>, vector<1x8x128xf32>,
    return
  }
  func.func @transform_0(%arg0: i32) -> (i32, i32) {
    %c0_i32 = arith.constant 0 : i32
    %c0_i32_0 = arith.constant 0 : i32
    return %arg0, %c0_i32 : i32, i32
  }
  func.func @transform_1(%arg0: i32) -> (i32, i32) {
    %c0_i32 = arith.constant 0 : i32
    %c0_i32_0 = arith.constant 0 : i32
    return %arg0, %c0_i32 : i32, i32
  }
  func.func @transform_2(%arg0: i32) -> (i32, i32) {
    %c0_i32 = arith.constant 0 : i32
    %c0_i32_0 = arith.constant 0 : i32
    return %arg0, %c0_i32 : i32, i32
  }
  func.func @transform_3(%arg0: i32) -> (i32, i32, i32) {
    %c0_i32 = arith.constant 0 : i32
    %c0_i32_0 = arith.constant 0 : i32
    %c0_i32_1 = arith.constant 0 : i32
    return %arg0, %c0_i32, %c0_i32_0 : i32, i32, i32
  }
}

</mosaic_0001>

<bundles_post_ra>
// kernel: tpu_custom_call.1
= control target key start
LH: loop header
LB: loop body
LE: loop exit
PB: predicated region body
PF: predicated region fallthrough
CT: control target
= control target key end

     0   :  { %8 = vsyncpa [#allocation3], 0  ;;  %s346_s0 = inlined_call_operand.hbm [shape: f32[16,128], index: 0, kind: input, shape index: {}]   ;;  %s347_s1 = inlined_call_operand.hbm [shape: f32[16,128], index: 1, kind: input, shape index: {}]   ;;  %s348_s2 = inlined_call_operand.hbm [shape: f32[16,128], index: 2, kind: input, shape index: {}]   ;;  %s349_s3 = inlined_call_operand.hbm [shape: f32[1,8,128], index: 3, kind: output, shape index: {}]  }
   0x1   :  { %9 = vsyncpa [#allocation6], 0 }
   0x2   :  { %10 = vsyncpa [#allocation4], 0  ;;  %s250_s12 = smov [#allocation5]   ;;  %s251_s14 = smov [#allocation2]  }
   0x3   :  { %s28_s13 = sshll.u32 %s250_s12, 4  ;;  %s16_s15 = sshll.u32 %s251_s14, 4  ;;  %s29_s13 = int_to_ptr.vmem [resolvable:$true] %s28_s13  ;;  %s276_s15 = int_to_ptr.vmem [resolvable:$true] %s16_s15 }
   0x4   :  { %s156_s18 = scalar_lea.hbm %s347_s1, 256 }
   0x5   :  { %p157_p0 = scmp.ne.s32.totalorder %s347_s1, %s156_s18  ;;  %p160_p1 = scmp.lt.u32.totalorder %s156_s18, %s347_s1 }
   0x7   :  { %p162_p2 = pnand %p160_p1, %p157_p0 }
   0x9   :  { %165 = shalt.err (!%p162_p2)
}
   0xa   :  { %s166_s23 = scalar_lea.vmem %s29_s13, 256  ;;  %p171_p4 = scmp.lt.s32.totalorder %s29_s13, %s29_s13 }
   0xb   :  { %p167_p3 = scmp.ne.s32.totalorder %s29_s13, %s166_s23  ;;  %p172_p5 = scmp.lt.s32.totalorder %s166_s23, %s166_s23 }
   0xd   :  { %p173_p6 = por %p172_p5, %p171_p4 }
   0xf   :  { %p174_p7 = pnand %p173_p6, %p167_p3 }
  0x11   :  { %177 = shalt.err (!%p174_p7)
}
  0x12   :  { %s252_s24 = smov 128   ;;  %s253_s25 = smov 8  }
  0x13   :  { %34 = dma.hbm_to_vmem [thread:$0]  %s347_s1, 256, %s29_s13, [#allocation6], %s252_s24, %s252_s24, %s253_s25  }
  0x14   :  { %s178_s30 = scalar_lea.hbm %s346_s0, 256 }
  0x15   :  { %p179_p8 = scmp.ne.s32.totalorder %s346_s0, %s178_s30  ;;  %p182_p9 = scmp.lt.u32.totalorder %s178_s30, %s346_s0 }
  0x17   :  { %p184_p10 = pnand %p182_p9, %p179_p8 }
  0x19   :  { %187 = shalt.err (!%p184_p10)
}
  0x1a   :  { %s188_s8 = scalar_lea.vmem %s276_s15, 256  ;;  %p193_p12 = scmp.lt.s32.totalorder %s276_s15, %s276_s15 }
  0x1b   :  { %p189_p11 = scmp.ne.s32.totalorder %s276_s15, %s188_s8  ;;  %p194_p13 = scmp.lt.s32.totalorder %s188_s8, %s188_s8 }
  0x1d   :  { %p195_p0 = por %p194_p13, %p193_p12 }
  0x1f   :  { %p196_p1 = pnand %p195_p0, %p189_p11 }
  0x21   :  { %199 = shalt.err (!%p196_p1)
}
  0x22   :  { %22 = dma.hbm_to_vmem [thread:$0]  %s346_s0, 256, %s276_s15, [#allocation3], %s252_s24, %s252_s24, %s253_s25  }
  0x23   :  { %s254_s10 = smov [#allocation7]   ;;  %s200_s14 = scalar_lea.hbm %s348_s2, 256 }
  0x24   :  { %s40_s11 = sshll.u32 %s254_s10, 4  ;;  %p201_p2 = scmp.ne.s32.totalorder %s348_s2, %s200_s14  ;;  %s41_s11 = int_to_ptr.vmem [resolvable:$true] %s40_s11 }
  0x25   :  { %p204_p3 = scmp.lt.u32.totalorder %s200_s14, %s348_s2 }
  0x27   :  { %p206_p4 = pnand %p204_p3, %p201_p2 }
  0x29   :  { %209 = shalt.err (!%p206_p4)
}
  0x2a   :  { %s210_s20 = scalar_lea.vmem %s41_s11, 256  ;;  %p215_p6 = scmp.lt.s32.totalorder %s41_s11, %s41_s11 }
  0x2b   :  { %p211_p5 = scmp.ne.s32.totalorder %s41_s11, %s210_s20  ;;  %p216_p7 = scmp.lt.s32.totalorder %s210_s20, %s210_s20 }
  0x2d   :  { %p217_p8 = por %p216_p7, %p215_p6 }
  0x2f   :  { %p218_p9 = pnand %p217_p8, %p211_p5 }
  0x31   :  { %221 = shalt.err (!%p218_p9)
}
  0x32   :  { %46 = dma.hbm_to_vmem [thread:$0]  %s348_s2, 256, %s41_s11, [#allocation6], %s252_s24, %s252_s24, %s253_s25  }
  0x33   :  { %244 = dma.done.wait [#allocation3], 256  }
  0x34   :  { %245 = vsyncadd [#allocation3], 4294967040 }
  0x35   :  { %246 = dma.done.wait [#allocation6], 512  }
  0x36   :  { %247 = vsyncadd [#allocation6], 4294966784  ;;  %v56_v0 = vld [vmem:[#allocation2] sm:$0xff]  ;;  %v57_v1 = vld [vmem:[#allocation2 + $0x8] sm:$0xff]  ;;  %s255_s2 = smov [#allocation8]  }
  0x37   :  { %v62_v2 = vand.u32 2147483647, %v56_v0  ;;  %v63_v3 = vand.u32 2147483647, %v57_v1  ;;  %vm72_vm0 = vcmp.ge.f32.partialorder %v56_v0, 0.0  ;;  %v58_v14 = vld [vmem:[#allocation5] sm:$0xff] }
  0x38   :  { %vm73_vm1 = vcmp.ge.f32.partialorder %v57_v1, 0.0  ;;  %v59_v15 = vld [vmem:[#allocation5 + $0x8] sm:$0xff]  ;;  %v60_v20 = vld [vmem:[#allocation7] sm:$0xff]  ;;  %v92_v22 = vmax.f32 %v56_v0, 0.0  ;;  %v94_v23 = vmul.f32 %v58_v14, %v56_v0  ;;  %v93_v26 = vmax.f32 %v57_v1, 0.0  ;;  %v61_v29 = vld [vmem:[#allocation7 + $0x8] sm:$0xff] }
  0x39   :  { %v64_v4 = vsub.f32 0.0, %v62_v2  ;;  %v65_v5 = vsub.f32 0.0, %v63_v3  ;;  %v95_v27 = vmul.f32 %v59_v15, %v57_v1  ;;  %v84_v34 = vsub.f32 1.0, %v60_v20  ;;  %s128_s21 = sshll.u32 %s255_s2, 4  ;;  %s129_s21 = int_to_ptr.vmem [resolvable:$true] %s128_s21 }
  0x3a   :  { %v96_v39 = vsub.f32 %v92_v22, %v94_v23  ;;  %v85_v42 = vsub.f32 1.0, %v61_v29  ;;  %v88_v46 = vmul.f32 %v60_v20, %v58_v14  ;;  %v89_v49 = vmul.f32 %v61_v29, %v59_v15  ;;  %s222_s22 = scalar_lea.vmem %s129_s21, 128  ;;  %p227_p11 = scmp.lt.s32.totalorder %s129_s21, %s129_s21 }
  0x3b   :  { %v66_v6 = vmul.f32 1.442695, %v64_v4  ;;  %v68_v7 = vmul.f32 1.442695, %v65_v5  ;;  %v97_v43 = vsub.f32 %v93_v26, %v95_v27  ;;  %p223_p10 = scmp.ne.s32.totalorder %s129_s21, %s222_s22  ;;  %p228_p12 = scmp.lt.s32.totalorder %s222_s22, %s222_s22 }
  0x3d   :  { %144 = vpow2.f32 %v66_v6  ;;  %p229_p13 = por %p228_p12, %p227_p11 }
  0x3e   :  { %146 = vpow2.f32 %v68_v7 }
  0x3f   :  { %p230_p0 = pnand %p229_p13, %p223_p10 }
  0x47   :  { %v145_v8 = vpop.eup %144 }
  0x48   :  { %v147_v9 = vpop.eup %146  ;;  %v70_v10 = vadd.f32 1.0, %v145_v8  ;;  %v101_v12 = vmul.f32 -0.5, %v145_v8  ;;  %v74_v17 = vsel %vm72_vm0, 1.0, %v145_v8  ;;  %v104_v18 = vand.u32 2147483647, %v145_v8 }
  0x49   :  { %v71_v11 = vadd.f32 1.0, %v147_v9  ;;  %v110_v13 = vmul.f32 -0.5, %v147_v9  ;;  %v75_v21 = vsel %vm73_vm1, 1.0, %v147_v9  ;;  %v113_v24 = vand.u32 2147483647, %v147_v9 }
  0x4a   :  { %148 = vrcp.f32 %v70_v10  ;;  %v102_v16 = vadd.f32 1.0, %v101_v12  ;;  %vm328_vm2 = vcmp.lt.f32.partialorder %v104_v18, 0.0004427343 }
  0x4b   :  { %150 = vrcp.f32 %v71_v11  ;;  %v111_v19 = vadd.f32 1.0, %v110_v13  ;;  %vm114_vm3 = vcmp.lt.f32.partialorder %v113_v24, 0.0004427343 }
  0x4c   :  { %152 = vlog2.f32 %v70_v10  ;;  %v103_v31 = vmul.f32 %v145_v8, %v102_v16 }
  0x4d   :  { %154 = vlog2.f32 %v71_v11  ;;  %v112_v36 = vmul.f32 %v147_v9, %v111_v19 }
  0x54   :  { %v149_v25 = vpop.eup %148 }
  0x55   :  { %v151_v28 = vpop.eup %150  ;;  %v77_v30 = vmul.f32 %v149_v25, %v74_v17 }
  0x56   :  { %v153_v32 = vpop.eup %152  ;;  %v79_v33 = vmul.f32 %v151_v28, %v75_v21 }
  0x57   :  { %v155_v37 = vpop.eup %154  ;;  %v80_v38 = vmul.f32 %v77_v30, %v77_v30  ;;  %v100_v40 = vmul.f32 0.6931472, %v153_v32 }
  0x58   :  { %v81_v41 = vmul.f32 %v79_v33, %v79_v33  ;;  %v109_v44 = vmul.f32 0.6931472, %v155_v37 }
  0x59   :  { %v82_v45 = vmul.f32 0.75, %v80_v38  ;;  %v106_v47 = vsel %vm328_vm2, %v103_v31, %v100_v40 }
  0x5a   :  { %v83_v48 = vmul.f32 0.75, %v81_v41  ;;  %v115_v50 = vsel %vm114_vm3, %v112_v36, %v109_v44  ;;  %v116_v52 = vadd.f32 %v106_v47, %v96_v39 }
  0x5b   :  { %v86_v51 = vmul.f32 %v84_v34, %v82_v45  ;;  %v117_v54 = vadd.f32 %v115_v50, %v97_v43 }
  0x5c   :  { %v87_v53 = vmul.f32 %v85_v42, %v83_v48 }
  0x5d   :  { %v90_v55 = vadd.f32 %v88_v46, %v86_v51 }
  0x5e   :  { %v91_v56 = vadd.f32 %v89_v49, %v87_v53 }
  0x5f   :  { %v118_v57 = vmul.f32 %v116_v52, %v90_v55 }
  0x60   :  { %v119_v58 = vmul.f32 %v117_v54, %v91_v56 }
  0x62   :  { %v120_v59 = vadd.f32 %v119_v58, %v118_v57 }
  0x64   :  { %121 = vst [vmem:[#allocation8] sm:$0xff] %v120_v59 }
  0x65   :  { %233 = shalt.err (!%p230_p0)
}
  0x66   :  { %s234_s25 = scalar_lea.hbm %s349_s3, 128 }
  0x67   :  { %p235_p1 = scmp.ne.s32.totalorder %s349_s3, %s234_s25  ;;  %p238_p2 = scmp.lt.u32.totalorder %s234_s25, %s349_s3 }
  0x69   :  { %p240_p3 = pnand %p238_p2, %p235_p1 }
  0x6b   :  { %243 = shalt.err (!%p240_p3)
}
  0x6c   :  { %131 = dma.vmem_to_hbm [thread:$0]  %s129_s21, 128, %s349_s3, [#allocation4]  }
  0x6d   :  { %248 = dma.done.wait [#allocation4], 128  }
  0x6e   :  { %249 = vsyncadd [#allocation4], 4294967168 }
  0x6f   :  { %135 = vsyncpa [#allocation3], 1 }
  0x70   :  { %136 = vsyncpa [#allocation6], 1 }
  0x71   :  { %137 = vsyncpa [#allocation4], 1 }

</bundles_post_ra>
